<compile_context>
chip_gen: v7x
topology: tpu7x:2x2x1
jax: 0.10.0
libtpu: 0.0.40
codegen_flags: <defaults>
</compile_context>

<pallas_src>
import functools
import math

import jax
import jax.numpy as jnp
from jax.experimental import pallas as pl
from jax.experimental.pallas import tpu as pltpu

_LANE = 128          # lane width: pad action dim to a multiple of this
_BATCH_ALIGN = 16    # bf16 packs 16 rows per vreg -> pad batch to multiples of 16
_NEG_BIG = -1e30     # effectively -inf for masked (padded) logit columns


def _round_up(x, m):
    return ((x + m - 1) // m) * m


# ---------------------------------------------------------------------------
# Pallas kernel: full Actor forward (3 x Linear + ReLU + masked softmax) on one
# batch tile; all weights stay resident in VMEM across grid steps.
# ---------------------------------------------------------------------------
def actor_kernel(x_ref, w1_ref, b1_ref, w2_ref, b2_ref, w3_ref, b3_ref,
                 probs_ref, *, num_actions):
    x = x_ref[...]                                               # [TILE_B, S] bf16

    # linear1 + ReLU : [TILE_B, S] @ [S, 128] -> f32
    h1 = jnp.dot(x, w1_ref[...], preferred_element_type=jnp.float32) + b1_ref[...]
    h1 = jnp.maximum(h1, 0.0)

    # linear2 + ReLU : [TILE_B, 128] @ [128, 512] -> f32
    h2 = jnp.dot(h1.astype(jnp.bfloat16), w2_ref[...],
                 preferred_element_type=jnp.float32) + b2_ref[...]
    h2 = jnp.maximum(h2, 0.0)

    # dropout(p=0.2) in eval mode == identity (see header note)

    # linear3 : [TILE_B, 512] @ [512, A_pad] -> f32
    logits = jnp.dot(h2.astype(jnp.bfloat16), w3_ref[...],
                     preferred_element_type=jnp.float32) + b3_ref[...]

    # mask padded action columns so they contribute 0 probability
    col = jax.lax.broadcasted_iota(jnp.int32, logits.shape, 1)
    logits = jnp.where(col < num_actions, logits, _NEG_BIG)

    # numerically-stable softmax over the (lane) action dim
    m = jnp.max(logits, axis=-1, keepdims=True)
    e = jnp.exp(logits - m)
    denom = jnp.sum(e, axis=-1, keepdims=True)
    # EUP approximate reciprocal + one Newton refinement (keeps VALU free of divides)
    r = pl.reciprocal(denom, approx=True)
    r = r * (2.0 - denom * r)
    probs_ref[...] = e * r


# ---------------------------------------------------------------------------
# Wrapper: pad batch / actions, cast matmul operands to bf16, tile over batch.
# ---------------------------------------------------------------------------
def actor_forward(x, params, *, tile_b=512):
    """x: [B, S] float32 -> Categorical probabilities [B, A] float32."""
    w1, b1, w2, b2, w3, b3 = params
    B, S = x.shape
    H1 = w1.shape[1]
    H2 = w2.shape[1]
    A = w3.shape[1]
    A_pad = _round_up(A, _LANE)

    # Pick batch tile: one tile if the (aligned) batch fits, else fat tiles of tile_b.
    tile_b = _round_up(tile_b, _BATCH_ALIGN)
    B_aligned = _round_up(max(B, _BATCH_ALIGN), _BATCH_ALIGN)
    if B_aligned <= tile_b:
        TILE_B = B_aligned
        B_pad = B_aligned
    else:
        TILE_B = tile_b
        B_pad = _round_up(B, TILE_B)

    # Pad batch and action dims; cast matmul operands to bf16 (f32 accumulate in-kernel).
    x_p = jnp.pad(x, ((0, B_pad - B), (0, 0))) if B_pad != B else x
    x_bf = x_p.astype(jnp.bfloat16)
    w1_bf = w1.astype(jnp.bfloat16)
    w2_bf = w2.astype(jnp.bfloat16)
    w3_bf = jnp.pad(w3, ((0, 0), (0, A_pad - A))).astype(jnp.bfloat16)
    b1_f = b1.astype(jnp.float32)
    b2_f = b2.astype(jnp.float32)
    b3_f = jnp.pad(b3, ((0, 0), (0, A_pad - A))).astype(jnp.float32)

    grid = (B_pad // TILE_B,)
    kernel = functools.partial(actor_kernel, num_actions=A)

    flops = 2 * B_pad * (S * H1 + H1 * H2 + H2 * A_pad)
    bytes_accessed = (
        x_bf.size * 2 + B_pad * A_pad * 4
        + w1_bf.size * 2 + w2_bf.size * 2 + w3_bf.size * 2
        + b1_f.size * 4 + b2_f.size * 4 + b3_f.size * 4
    )
    cost = pl.CostEstimate(
        flops=flops,
        transcendentals=B_pad * A_pad,   # exp in softmax
        bytes_accessed=bytes_accessed,
    )

    weight_specs = [
        pl.BlockSpec((S, H1), lambda i: (0, 0)),
        pl.BlockSpec((1, H1), lambda i: (0, 0)),
        pl.BlockSpec((H1, H2), lambda i: (0, 0)),
        pl.BlockSpec((1, H2), lambda i: (0, 0)),
        pl.BlockSpec((H2, A_pad), lambda i: (0, 0)),
        pl.BlockSpec((1, A_pad), lambda i: (0, 0)),
    ]

    probs_pad = pl.pallas_call(
        kernel,
        out_shape=jax.ShapeDtypeStruct((B_pad, A_pad), jnp.float32),
        grid=grid,
        in_specs=[pl.BlockSpec((TILE_B, S), lambda i: (i, 0))] + weight_specs,
        out_specs=pl.BlockSpec((TILE_B, A_pad), lambda i: (i, 0)),
        compiler_params=pltpu.CompilerParams(
            dimension_semantics=("parallel",)),
        cost_estimate=cost,
    )(x_bf, w1_bf, b1_f, w2_bf, b2_f, w3_bf, b3_f)

    return probs_pad[:B, :A]


# ---------------------------------------------------------------------------
# Deterministic parameter init (mimics nn.Linear's U(-1/sqrt(fan_in), +...)).
# Weights stored [in, out]; biases as [1, out] (2-D for TPU friendliness).
# ---------------------------------------------------------------------------
def init_linear(key, fan_in, fan_out):
    kw, kb = jax.random.split(key)
    bound = 1.0 / math.sqrt(fan_in)
    w = jax.random.uniform(kw, (fan_in, fan_out), jnp.float32, -bound, bound)
    b = jax.random.uniform(kb, (1, fan_out), jnp.float32, -bound, bound)
    return w, b


def init_actor_params(key, state_size, action_size):
    k1, k2, k3 = jax.random.split(key, 3)
    w1, b1 = init_linear(k1, state_size, 128)
    w2, b2 = init_linear(k2, 128, 512)
    w3, b3 = init_linear(k3, 512, action_size)
    return (w1, b1, w2, b2, w3, b3)


def actor_reference(x, params):
    """Pure-JAX f32 reference of the PyTorch forward (eval mode)."""
    w1, b1, w2, b2, w3, b3 = params
    h1 = jnp.maximum(x @ w1 + b1, 0.0)
    h2 = jnp.maximum(h1 @ w2 + b2, 0.0)
    logits = h2 @ w3 + b3
    return jax.nn.softmax(logits, axis=-1)


if __name__ == "__main__":
    # Small, MicroGridEnv-like sizes: 8-dim observation, 6 discrete actions.
    batch = 4
    state_size = 8
    action_size = 6

    key = jax.random.PRNGKey(0)
    k_params, k_state = jax.random.split(key)

    params = init_actor_params(k_params, state_size, action_size)
    state = jax.random.normal(k_state, (batch, state_size), dtype=jnp.float32)

    probs = actor_forward(state, params)
    probs = jax.block_until_ready(probs)

    # Sanity: shape, rows sum to 1, and agreement with the f32 reference
    # (tolerance covers the bf16 matmul operands).
    assert probs.shape == (batch, action_size)
    assert bool(jnp.all(jnp.abs(jnp.sum(probs, axis=-1) - 1.0) < 1e-4))
    ref = actor_reference(state, params)
    assert bool(jnp.allclose(probs, ref, atol=2e-2))

    print("KERNEL_OK")
</pallas_src>

<mosaic_0001>
module attributes {stable_mosaic.version = 11 : i64} {
  func.func @actor_kernel(%arg0: i32, %arg1: memref<16x8xbf16, #tpu.memory_space<vmem>>, %arg2: memref<8x128xbf16, #tpu.memory_space<vmem>>, %arg3: memref<1x128xf32, #tpu.memory_space<vmem>>, %arg4: memref<128x512xbf16, #tpu.memory_space<vmem>>, %arg5: memref<1x512xf32, #tpu.memory_space<vmem>>, %arg6: memref<512x128xbf16, #tpu.memory_space<vmem>>, %arg7: memref<1x128xf32, #tpu.memory_space<vmem>>, %arg8: memref<16x128xf32, #tpu.memory_space<vmem>>) attributes {dimension_semantics = [#tpu.dimension_semantics<parallel>], iteration_bounds = array<i64: 1>, scalar_prefetch = 0 : i64, scratch_operands = 0 : i64, tpu.core_type = #tpu.core_type<tc>, window_params = [{transform_indices = @transform_0, window_bounds = array<i64: 16, 8>}, {pipeline_mode = #tpu.pipeline_mode<synchronous>, transform_indices = @transform_1, window_bounds = array<i64: 8, 128>}, {pipeline_mode = #tpu.pipeline_mode<synchronous>, transform_indices = @transform_2, window_bounds = array<i64: 1, 128>}, {pipeline_mode = #tpu.pipeline_mode<synchronous>, transform_indices = @transform_3, window_bounds = array<i64: 128, 512>}, {pipeline_mode = #tpu.pipeline_mode<synchronous>, transform_indices = @transform_4, window_bounds = array<i64: 1, 512>}, {pipeline_mode = #tpu.pipeline_mode<synchronous>, transform_indices = @transform_5, window_bounds = array<i64: 512, 128>}, {pipeline_mode = #tpu.pipeline_mode<synchronous>, transform_indices = @transform_6, window_bounds = array<i64: 1, 128>}, {transform_indices = @transform_7, window_bounds = array<i64: 16, 128>}]} {
    %c0 = arith.constant 0 : index
    %c0_0 = arith.constant 0 : index
    %0 = vector.load %arg1[%c0, %c0_0] : memref<16x8xbf16, #tpu.memory_space<vmem>>, vector<16x8xbf16>
    %c0_1 = arith.constant 0 : index
    %c0_2 = arith.constant 0 : index
    %1 = vector.load %arg2[%c0_1, %c0_2] : memref<8x128xbf16, #tpu.memory_space<vmem>>, vector<8x128xbf16>
    %cst = arith.constant dense<0.000000e+00> : vector<16x128xf32>
    %2 = tpu.matmul %0, %1, %cst {dimension_numbers = #tpu.dot_dimension_numbers<[1], [0], [0], [1], [0, 0, 1, 1], [], []>} : vector<16x8xbf16>, vector<8x128xbf16>, vector<16x128xf32> -> vector<16x128xf32>
    %c0_3 = arith.constant 0 : index
    %c0_4 = arith.constant 0 : index
    %3 = vector.load %arg3[%c0_3, %c0_4] : memref<1x128xf32, #tpu.memory_space<vmem>>, vector<1x128xf32>
    %4 = vector.broadcast %3 : vector<1x128xf32> to vector<16x128xf32>
    %5 = arith.addf %2, %4 : vector<16x128xf32>
    %cst_5 = arith.constant 0.000000e+00 : f32
    %6 = vector.broadcast %cst_5 : f32 to vector<16x128xf32>
    %7 = arith.maximumf %5, %6 : vector<16x128xf32>
    %8 = arith.truncf %7 : vector<16x128xf32> to vector<16x128xbf16>
    %c0_6 = arith.constant 0 : index
    %c0_7 = arith.constant 0 : index
    %9 = vector.load %arg4[%c0_6, %c0_7] : memref<128x512xbf16, #tpu.memory_space<vmem>>, vector<128x512xbf16>
    %cst_8 = arith.constant dense<0.000000e+00> : vector<16x512xf32>
    %10 = tpu.matmul %8, %9, %cst_8 {dimension_numbers = #tpu.dot_dimension_numbers<[1], [0], [0], [1], [0, 0, 1, 1], [], []>} : vector<16x128xbf16>, vector<128x512xbf16>, vector<16x512xf32> -> vector<16x512xf32>
    %c0_9 = arith.constant 0 : index
    %c0_10 = arith.constant 0 : index
    %11 = vector.load %arg5[%c0_9, %c0_10] : memref<1x512xf32, #tpu.memory_space<vmem>>, vector<1x512xf32>
    %12 = vector.broadcast %11 : vector<1x512xf32> to vector<16x512xf32>
    %13 = arith.addf %10, %12 : vector<16x512xf32>
    %cst_11 = arith.constant 0.000000e+00 : f32
    %14 = vector.broadcast %cst_11 : f32 to vector<16x512xf32>
    %15 = arith.maximumf %13, %14 : vector<16x512xf32>
    %16 = arith.truncf %15 : vector<16x512xf32> to vector<16x512xbf16>
    %c0_12 = arith.constant 0 : index
    %c0_13 = arith.constant 0 : index
    %17 = vector.load %arg6[%c0_12, %c0_13] : memref<512x128xbf16, #tpu.memory_space<vmem>>, vector<512x128xbf16>
    %cst_14 = arith.constant dense<0.000000e+00> : vector<16x128xf32>
    %18 = tpu.matmul %16, %17, %cst_14 {dimension_numbers = #tpu.dot_dimension_numbers<[1], [0], [0], [1], [0, 0, 1, 1], [], []>} : vector<16x512xbf16>, vector<512x128xbf16>, vector<16x128xf32> -> vector<16x128xf32>
    %c0_15 = arith.constant 0 : index
    %c0_16 = arith.constant 0 : index
    %19 = vector.load %arg7[%c0_15, %c0_16] : memref<1x128xf32, #tpu.memory_space<vmem>>, vector<1x128xf32>
    %20 = vector.broadcast %19 : vector<1x128xf32> to vector<16x128xf32>
    %21 = arith.addf %18, %20 : vector<16x128xf32>
    %22 = tpu.iota {dimensions = array<i32: 1>} : vector<16x128xi32>
    %c6_i32 = arith.constant 6 : i32
    %23 = vector.broadcast %c6_i32 : i32 to vector<16x128xi32>
    %24 = arith.cmpi slt, %22, %23 : vector<16x128xi32>
    %cst_17 = arith.constant -1.000000e+30 : f32
    %25 = vector.broadcast %cst_17 : f32 to vector<16x128xf32>
    %26 = arith.select %24, %21, %25 : vector<16x128xi1>, vector<16x128xf32>
    %cst_18 = arith.constant dense<0xFF800000> : vector<16xf32>
    %27 = vector.multi_reduction <maximumf>, %26, %cst_18 [1] : vector<16x128xf32> to vector<16xf32>
    %28 = vector.shape_cast %27 : vector<16xf32> to vector<16x1xf32>
    %29 = vector.broadcast %28 : vector<16x1xf32> to vector<16x128xf32>
    %30 = arith.subf %26, %29 : vector<16x128xf32>
    %31 = math.exp %30 : vector<16x128xf32>
    %cst_19 = arith.constant dense<0.000000e+00> : vector<16xf32>
    %32 = vector.multi_reduction <add>, %31, %cst_19 [1] : vector<16x128xf32> to vector<16xf32>
    %33 = vector.shape_cast %32 : vector<16xf32> to vector<16x1xf32>
    %34 = tpu.reciprocal %33 {approx = true} : vector<16x1xf32> -> vector<16x1xf32>
    %35 = arith.mulf %33, %34 : vector<16x1xf32>
    %cst_20 = arith.constant 2.000000e+00 : f32
    %36 = vector.broadcast %cst_20 : f32 to vector<16x1xf32>
    %37 = arith.subf %36, %35 : vector<16x1xf32>
    %38 = arith.mulf %34, %37 : vector<16x1xf32>
    %39 = vector.broadcast %38 : vector<16x1xf32> to vector<16x128xf32>
    %40 = arith.mulf %31, %39 : vector<16x128xf32>
    %c0_21 = arith.constant 0 : index
    %c0_22 = arith.constant 0 : index
    %41 = vector.load %arg8[%c0_21, %c0_22] : memref<16x128xf32, #tpu.memory_space<vmem>>, vector<16x128xf32>
    tpu.vector_store %arg8[%c0_21, %c0_22], %40 {strides = array<i32>} : memref<16x128xf32, #tpu.memory_space<vmem>>, vector<16x128xf32>,
    return
  }
  func.func @transform_0(%arg0: i32) -> (i32, i32) {
    %c0_i32 = arith.constant 0 : i32
    %c0_i32_0 = arith.constant 0 : i32
    return %arg0, %c0_i32 : i32, i32
  }
  func.func @transform_1(%arg0: i32) -> (i32, i32) {
    %c0_i32 = arith.constant 0 : i32
    %c0_i32_0 = arith.constant 0 : i32
    %c0_i32_1 = arith.constant 0 : i32
    return %c0_i32, %c0_i32_0 : i32, i32
  }
  func.func @transform_2(%arg0: i32) -> (i32, i32) {
    %c0_i32 = arith.constant 0 : i32
    %c0_i32_0 = arith.constant 0 : i32
    %c0_i32_1 = arith.constant 0 : i32
    return %c0_i32, %c0_i32_0 : i32, i32
  }
  func.func @transform_3(%arg0: i32) -> (i32, i32) {
    %c0_i32 = arith.constant 0 : i32
    %c0_i32_0 = arith.constant 0 : i32
    %c0_i32_1 = arith.constant 0 : i32
    return %c0_i32, %c0_i32_0 : i32, i32
  }
  func.func @transform_4(%arg0: i32) -> (i32, i32) {
    %c0_i32 = arith.constant 0 : i32
    %c0_i32_0 = arith.constant 0 : i32
    %c0_i32_1 = arith.constant 0 : i32
    return %c0_i32, %c0_i32_0 : i32, i32
  }
  func.func @transform_5(%arg0: i32) -> (i32, i32) {
    %c0_i32 = arith.constant 0 : i32
    %c0_i32_0 = arith.constant 0 : i32
    %c0_i32_1 = arith.constant 0 : i32
    return %c0_i32, %c0_i32_0 : i32, i32
  }
  func.func @transform_6(%arg0: i32) -> (i32, i32) {
    %c0_i32 = arith.constant 0 : i32
    %c0_i32_0 = arith.constant 0 : i32
    %c0_i32_1 = arith.constant 0 : i32
    return %c0_i32, %c0_i32_0 : i32, i32
  }
  func.func @transform_7(%arg0: i32) -> (i32, i32) {
    %c0_i32 = arith.constant 0 : i32
    %c0_i32_0 = arith.constant 0 : i32
    return %arg0, %c0_i32 : i32, i32
  }
}

</mosaic_0001>

<bundles_post_ra>
// kernel: tpu_custom_call.1
= control target key start
LH: loop header
LB: loop body
LE: loop exit
PB: predicated region body
PF: predicated region fallthrough
CT: control target
= control target key end

     0   :  { %12 = vsyncpa [#allocation3], 0  ;;  %s1225_s0 = inlined_call_operand.vmem [shape: bf16[16,8], index: 0, kind: input, shape index: {}]   ;;  %s1226_s1 = inlined_call_operand.vmem [shape: bf16[8,128], index: 1, kind: input, shape index: {}]   ;;  %s1227_s2 = inlined_call_operand.vmem [shape: f32[1,128], index: 2, kind: input, shape index: {}]   ;;  %s1228_s3 = inlined_call_operand.hbm [shape: bf16[128,512], index: 3, kind: input, shape index: {}]   ;;  %s1229_s4 = inlined_call_operand.vmem [shape: f32[1,512], index: 4, kind: input, shape index: {}]   ;;  %s1230_s5 = inlined_call_operand.hbm [shape: bf16[512,128], index: 5, kind: input, shape index: {}]   ;;  %s1231_s6 = inlined_call_operand.vmem [shape: f32[1,128], index: 6, kind: input, shape index: {}]   ;;  %s1232_s7 = inlined_call_operand.hbm [shape: f32[16,128], index: 7, kind: output, shape index: {}]  }
   0x1   :  { %13 = vsyncpa [#allocation6], 0 }
   0x2   :  { %14 = vsyncpa [#allocation4], 0  ;;  %s1122_s24 = smov [#allocation2]   ;;  %s1050_s28 = scalar_lea.hbm %s1228_s3, 4096 }
   0x3   :  { %s26_s25 = sshll.u32 %s1122_s24, 4  ;;  %p1051_p0 = scmp.ne.s32.totalorder %s1228_s3, %s1050_s28  ;;  %s27_s25 = int_to_ptr.vmem [resolvable:$true] %s26_s25 }
   0x4   :  { %p1054_p1 = scmp.lt.u32.totalorder %s1050_s28, %s1228_s3 }
   0x6   :  { %p1056_p2 = pnand %p1054_p1, %p1051_p0 }
   0x8   :  { %1059 = shalt.err (!%p1056_p2)
}
   0x9   :  { %s1060_s10 = scalar_lea.vmem %s27_s25, 4096  ;;  %p1065_p4 = scmp.lt.s32.totalorder %s27_s25, %s27_s25 }
   0xa   :  { %p1061_p3 = scmp.ne.s32.totalorder %s27_s25, %s1060_s10  ;;  %p1066_p5 = scmp.lt.s32.totalorder %s1060_s10, %s1060_s10 }
   0xc   :  { %p1067_p6 = por %p1066_p5, %p1065_p4 }
   0xe   :  { %p1068_p7 = pnand %p1067_p6, %p1061_p3 }
  0x10   :  { %1071 = shalt.err (!%p1068_p7)
}
  0x11   :  { %s1123_s11 = smov 256   ;;  %s1124_s12 = smov 16  }
  0x12   :  { %32 = dma.hbm_to_vmem [thread:$0]  %s1228_s3, 4096, %s27_s25, [#allocation3], %s1123_s11, %s1123_s11, %s1124_s12  }
  0x13   :  { %s1125_s15 = smov [#allocation5]   ;;  %s1072_s19 = scalar_lea.hbm %s1230_s5, 4096 }
  0x14   :  { %s40_s16 = sshll.u32 %s1125_s15, 4  ;;  %p1073_p8 = scmp.ne.s32.totalorder %s1230_s5, %s1072_s19  ;;  %s41_s16 = int_to_ptr.vmem [resolvable:$true] %s40_s16 }
  0x15   :  { %p1076_p9 = scmp.lt.u32.totalorder %s1072_s19, %s1230_s5 }
  0x17   :  { %p1078_p10 = pnand %p1076_p9, %p1073_p8 }
  0x19   :  { %1081 = shalt.err (!%p1078_p10)
}
  0x1a   :  { %s1082_s24 = scalar_lea.vmem %s41_s16, 4096  ;;  %p1087_p12 = scmp.lt.s32.totalorder %s41_s16, %s41_s16 }
  0x1b   :  { %p1083_p11 = scmp.ne.s32.totalorder %s41_s16, %s1082_s24  ;;  %p1088_p13 = scmp.lt.s32.totalorder %s1082_s24, %s1082_s24 }
  0x1d   :  { %p1089_p0 = por %p1088_p13, %p1087_p12 }
  0x1f   :  { %p1090_p1 = pnand %p1089_p0, %p1083_p11 }
  0x21   :  { %1093 = shalt.err (!%p1090_p1)
}
  0x22   :  { %s1126_s3 = smov 64   ;;  %s1127_s25 = smov 4  }
  0x23   :  { %46 = dma.hbm_to_vmem [thread:$0]  %s1230_s5, 4096, %s41_s16, [#allocation6], %s1126_s3, %s1126_s3, %s1127_s25  }
  0x24   :  { %1116 = dma.done.wait [#allocation3], 4096  }
  0x25   :  { %1117 = vsyncadd [#allocation3], 4294963200 }
  0x26   :  { %1118 = dma.done.wait [#allocation6], 4096  }
  0x27   :  { %1119 = vsyncadd [#allocation6], 4294963200  ;;  %v1128_v0 = vmov 0.0   ;;  %vm1129_vm0 = vmmov 0   ;;  %vm75_vm1 = vcmask 1043456   ;;  %v961_v3 = vld [vmem:[%s1225_s0] sm:$0xff]  }
  0x28   :  { %943 = vmatprep.subr.bf16.mxu0 %v1128_v0  ;;  %945 = vmatprep.mubr.msk.bf16.mxu0 %vm1129_vm0, %v1128_v0  ;;  %v58_v1 = vld [vmem:[%s1226_s1] sm:$0xf]  ;;  %vm71_vm2 = vcmask 64512   ;;  %v962_v4 = vld [vmem:[#allocation2 + $0x4] ss:$16 sps:$4 sm:$0xff]   ;;  %v1130_v36 = vmov 0  }
  0x29   :  { %v77_v2 = vsel %vm75_vm1, %v58_v1, 0  ;;  %v964_v5 = vld [vmem:[#allocation2 + $0x8] ss:$16 sps:$4 sm:$0xff]   ;;  %v966_v6 = vld [vmem:[#allocation2 + $0xc] ss:$16 sps:$4 sm:$0xff]   ;;  %337 = vmatprep.subr.bf16.mxu1 %v962_v4  ;;  %369 = vmatprep.mubr.bf16.mxu1 %v1130_v36  ;;  %v1010_v37 = vld [vmem:[#allocation5 + $0x40] sm:$0xff]  }
  0x2a   :  { %944 = vmatpush3.bf16.msra.mxu0 %v77_v2  ;;  %v967_v7 = vld [vmem:[#allocation2] ss:$16 sps:$4 sm:$0xff]   ;;  %v968_v8 = vld [vmem:[#allocation2 + $0x24] ss:$16 sps:$4 sm:$0xff]   ;;  %v970_v9 = vld [vmem:[#allocation2 + $0x28] ss:$16 sps:$4 sm:$0xff]  }
  0x2b   :  { %380 = vmatprep.subr.bf16.mxu0 %v966_v6  ;;  %338 = vmatpush1.bf16.msra.mxu1 %v967_v7  ;;  %v972_v10 = vld [vmem:[#allocation2 + $0x2c] ss:$16 sps:$4 sm:$0xff]   ;;  %v973_v11 = vld [vmem:[#allocation2 + $0x20] ss:$16 sps:$4 sm:$0xff]   ;;  %v974_v12 = vld [vmem:[#allocation2 + $0x44] ss:$16 sps:$4 sm:$0xff]  }
  0x2c   :  { %339 = vmatprep.subr.bf16.mxu1 %v968_v8  ;;  %v978_v13 = vld [vmem:[#allocation2 + $0x4c] ss:$16 sps:$4 sm:$0xff]   ;;  %v976_v14 = vld [vmem:[#allocation2 + $0x48] ss:$16 sps:$4 sm:$0xff]   ;;  %v979_v15 = vld [vmem:[#allocation2 + $0x40] ss:$16 sps:$4 sm:$0xff]  }
  0x2d   :  { %946 = vmatmul.mubr.msk.bf16.vlgmr.msra.gmra.mrb[0].mxu0 %vm71_vm2, %v961_v3  ;;  %v980_v16 = vld [vmem:[#allocation2 + $0x64] ss:$16 sps:$4 sm:$0xff]   ;;  %v984_v17 = vld [vmem:[#allocation2 + $0x6c] ss:$16 sps:$4 sm:$0xff]   ;;  %v982_v18 = vld [vmem:[#allocation2 + $0x68] ss:$16 sps:$4 sm:$0xff]  }
  0x2e   :  { %381 = vmatpush1.bf16.msra.mxu0 %v964_v5  ;;  %v985_v19 = vld [vmem:[#allocation2 + $0x60] ss:$16 sps:$4 sm:$0xff]   ;;  %v986_v20 = vld [vmem:[#allocation2 + $0x84] ss:$16 sps:$4 sm:$0xff]   ;;  %v990_v21 = vld [vmem:[#allocation2 + $0x8c] ss:$16 sps:$4 sm:$0xff]   ;;  %412 = vmatprep.mubr.bf16.mxu0 %v1130_v36 }
  0x2f   :  { %382 = vmatprep.subr.bf16.mxu0 %v972_v10  ;;  %340 = vmatpush1.bf16.msra.mxu1 %v973_v11  ;;  %v988_v22 = vld [vmem:[#allocation2 + $0x88] ss:$16 sps:$4 sm:$0xff]   ;;  %v991_v23 = vld [vmem:[#allocation2 + $0x80] ss:$16 sps:$4 sm:$0xff]   ;;  %v992_v24 = vld [vmem:[#allocation2 + $0xa4] ss:$16 sps:$4 sm:$0xff]  }
  0x30   :  { %341 = vmatprep.subr.bf16.mxu1 %v974_v12  ;;  %v996_v25 = vld [vmem:[#allocation2 + $0xac] ss:$16 sps:$4 sm:$0xff]   ;;  %v994_v26 = vld [vmem:[#allocation2 + $0xa8] ss:$16 sps:$4 sm:$0xff]   ;;  %v997_v27 = vld [vmem:[#allocation2 + $0xa0] ss:$16 sps:$4 sm:$0xff]  }
  0x31   :  { %v998_v28 = vld [vmem:[#allocation2 + $0xc4] ss:$16 sps:$4 sm:$0xff]   ;;  %v1002_v29 = vld [vmem:[#allocation2 + $0xcc] ss:$16 sps:$4 sm:$0xff]   ;;  %v1000_v30 = vld [vmem:[#allocation2 + $0xc8] ss:$16 sps:$4 sm:$0xff]  }
  0x32   :  { %383 = vmatpush1.bf16.msra.mxu0 %v970_v9  ;;  %v1003_v31 = vld [vmem:[#allocation2 + $0xc0] ss:$16 sps:$4 sm:$0xff]   ;;  %v1004_v32 = vld [vmem:[#allocation2 + $0xe4] ss:$16 sps:$4 sm:$0xff]   ;;  %v1008_v33 = vld [vmem:[#allocation2 + $0xec] ss:$16 sps:$4 sm:$0xff]  }
  0x33   :  { %384 = vmatprep.subr.bf16.mxu0 %v978_v13  ;;  %342 = vmatpush1.bf16.msra.mxu1 %v979_v15  ;;  %v1006_v34 = vld [vmem:[#allocation2 + $0xe8] ss:$16 sps:$4 sm:$0xff]   ;;  %v1009_v35 = vld [vmem:[#allocation2 + $0xe0] ss:$16 sps:$4 sm:$0xff]   ;;  %v157_v15 = vlaneseq }
  0x34   :  { %343 = vmatprep.subr.bf16.mxu1 %v980_v16  ;;  %v1011_v38 = vld [vmem:[#allocation5 + $0xc0] sm:$0xff]   ;;  %v1014_v51 = vld [vmem:[#allocation5 + $0x48] sm:$0xff]   ;;  %v1018_v55 = vld [vmem:[#allocation5 + $0x50] sm:$0xff]  }
  0x35   :  { %v829_v39 = vld [vmem:[%s1227_s2] ss:$0 sm:$0xff]  ;;  %v1015_v52 = vld [vmem:[#allocation5 + $0xc8] sm:$0xff]   ;;  %v1019_v56 = vld [vmem:[#allocation5 + $0xd0] sm:$0xff]   ;;  %v158_v16 = vshrl.u32 %v157_v15, 7 }
  0x36   :  { %385 = vmatpush1.bf16.msra.mxu0 %v976_v14  ;;  %v1012_v48 = vld [vmem:[#allocation5] sm:$0xff]   ;;  %v1016_v53 = vld [vmem:[#allocation5 + $0x8] sm:$0xff]   ;;  %v1020_v57 = vld [vmem:[#allocation5 + $0x10] sm:$0xff]  }
  0x37   :  { %386 = vmatprep.subr.bf16.mxu0 %v984_v17  ;;  %344 = vmatpush1.bf16.msra.mxu1 %v985_v19  ;;  %v1013_v49 = vld [vmem:[#allocation5 + $0x80] sm:$0xff]   ;;  %v1017_v54 = vld [vmem:[#allocation5 + $0x88] sm:$0xff]   ;;  %v1021_v58 = vld [vmem:[#allocation5 + $0x90] sm:$0xff]   ;;  %v159_v17 = vsub.s32 0, %v158_v16 }
  0x38   :  { %345 = vmatprep.subr.bf16.mxu1 %v986_v20  ;;  %v1022_v59 = vld [vmem:[#allocation5 + $0x58] sm:$0xff]   ;;  %v1026_v63 = vld [vmem:[#allocation5 + $0x60] sm:$0xff]   ;;  %v1030_v3 = vld [vmem:[#allocation5 + $0x68] sm:$0xff]   ;;  %v163_v20 = vsub.s32 1, %v158_v16 }
  0x39   :  { %v1023_v60 = vld [vmem:[#allocation5 + $0xd8] sm:$0xff]   ;;  %v1027_v0 = vld [vmem:[#allocation5 + $0xe0] sm:$0xff]   ;;  %v1031_v4 = vld [vmem:[#allocation5 + $0xe8] sm:$0xff]  }
  0x3a   :  { %387 = vmatpush1.bf16.msra.mxu0 %v982_v18  ;;  %v1024_v61 = vld [vmem:[#allocation5 + $0x18] sm:$0xff]   ;;  %v1028_v1 = vld [vmem:[#allocation5 + $0x20] sm:$0xff]   ;;  %v1032_v5 = vld [vmem:[#allocation5 + $0x28] sm:$0xff]   ;;  %v167_v18 = vsub.s32 2, %v158_v16 }
  0x3b   :  { %388 = vmatprep.subr.bf16.mxu0 %v990_v21  ;;  %346 = vmatpush1.bf16.msra.mxu1 %v991_v23  ;;  %v1025_v62 = vld [vmem:[#allocation5 + $0x98] sm:$0xff]   ;;  %v1029_v2 = vld [vmem:[#allocation5 + $0xa0] sm:$0xff]   ;;  %v1033_v6 = vld [vmem:[#allocation5 + $0xa8] sm:$0xff]   ;;  %v171_v21 = vsub.s32 3, %v158_v16 }
  0x3c   :  { %347 = vmatprep.subr.bf16.mxu1 %v992_v24  ;;  %v1034_v7 = vld [vmem:[#allocation5 + $0x70] sm:$0xff]   ;;  %v1038_v11 = vld [vmem:[#allocation5 + $0x78] sm:$0xff]   ;;  %v155_v19 = vld [vmem:[%s1229_s4] sm:$0xf] }
  0x3d   :  { %v1035_v8 = vld [vmem:[#allocation5 + $0xf0] sm:$0xff]   ;;  %v1039_v12 = vld [vmem:[#allocation5 + $0xf8] sm:$0xff]   ;;  %v168_v23 = vrot.slane %v155_v19, %v167_v18  ;;  %v164_v24 = vrot.slane %v155_v19, %v163_v20 }
  0x3e   :  { %389 = vmatpush1.bf16.msra.mxu0 %v988_v22  ;;  %v1036_v9 = vld [vmem:[#allocation5 + $0x30] sm:$0xff]   ;;  %v1040_v13 = vld [vmem:[#allocation5 + $0x38] sm:$0xff]   ;;  %v160_v22 = vrot.slane %v155_v19, %v159_v17 }
  0x3f   :  { %390 = vmatprep.subr.bf16.mxu0 %v996_v25  ;;  %348 = vmatpush1.bf16.msra.mxu1 %v997_v27  ;;  %v1037_v10 = vld [vmem:[#allocation5 + $0xb0] sm:$0xff]   ;;  %v1041_v14 = vld [vmem:[#allocation5 + $0xb8] sm:$0xff]   ;;  %v172_v25 = vrot.slane %v155_v19, %v171_v21 }
  0x40   :  { %349 = vmatprep.subr.bf16.mxu1 %v998_v28 }
  0x42   :  { %391 = vmatpush1.bf16.msra.mxu0 %v994_v26 }
  0x43   :  { %392 = vmatprep.subr.bf16.mxu0 %v1002_v29  ;;  %350 = vmatpush1.bf16.msra.mxu1 %v1003_v31 }
  0x44   :  { %351 = vmatprep.subr.bf16.mxu1 %v1004_v32 }
  0x46   :  { %393 = vmatpush1.bf16.msra.mxu0 %v1000_v30 }
  0x47   :  { %394 = vmatprep.subr.bf16.mxu0 %v1008_v33  ;;  %352 = vmatpush1.bf16.msra.mxu1 %v1009_v35 }
  0x48   :  { %899 = vmatprep.subr.bf16.mxu1 %v1010_v37 }
  0x4a   :  { %395 = vmatpush1.bf16.msra.mxu0 %v1006_v34 }
  0x4b   :  { %921 = vmatprep.subr.bf16.mxu0 %v1011_v38 }
 0x100   :  { %v113_v40 = vpop.f32.mrb[0].mxu0 }
 0x101   :  { %v114_v41 = vadd.f32 %v829_v39, %v113_v40  ;;  %v947_v42 = vpop.f32.mrb[1].mxu0 }
 0x102   :  { %v116_v43 = vpop.f32.mrb[2].mxu0 }
 0x103   :  { %v117_v44 = vadd.f32 %v829_v39, %v116_v43  ;;  %v948_v45 = vpop.f32.mrb[3].mxu0  ;;  %v120_v46 = vmax.f32 %v114_v41, 0.0 }
 0x105   :  { %v121_v47 = vmax.f32 %v117_v44, 0.0 }
 0x107   :  { %v122_v50 = vpack.c.bf16 %v121_v47, %v120_v46 }
 0x109   :  { %370 = vmatmul.mubr.bf16.vlgmr.msra.gmra.mrb[0].mxu1 %v122_v50  ;;  %413 = vmatmul.mubr.bf16.vlgmr.msra.gmra.mrb[4].mxu0 %v122_v50 }
 0x10a   :  { %900 = vmatpush3.bf16.msra.mxu1 %v1012_v48  ;;  %922 = vmatpush3.bf16.msra.mxu0 %v1013_v49 }
 0x10b   :  { %901 = vmatprep.subr.bf16.mxu1 %v1014_v51  ;;  %923 = vmatprep.subr.bf16.mxu0 %v1015_v52 }
 0x10e   :  { %902 = vmatpush3.bf16.msra.mxu1 %v1016_v53  ;;  %924 = vmatpush3.bf16.msra.mxu0 %v1017_v54 }
 0x10f   :  { %903 = vmatprep.subr.bf16.mxu1 %v1018_v55  ;;  %925 = vmatprep.subr.bf16.mxu0 %v1019_v56  ;;  %v864_v56 = vld [vmem:[%s1231_s6] ss:$0 sm:$0xff]  ;;  %s1131_s6 = smov [#allocation7]  }
 0x110   :  { %s816_s10 = sshll.u32 %s1131_s6, 4  ;;  %s817_s10 = int_to_ptr.vmem [resolvable:$true] %s816_s10 }
 0x111   :  { %s1094_s11 = scalar_lea.vmem %s817_s10, 256  ;;  %p1099_p3 = scmp.lt.s32.totalorder %s817_s10, %s817_s10 }
 0x112   :  { %904 = vmatpush3.bf16.msra.mxu1 %v1020_v57  ;;  %926 = vmatpush3.bf16.msra.mxu0 %v1021_v58  ;;  %p1095_p2 = scmp.ne.s32.totalorder %s817_s10, %s1094_s11  ;;  %p1100_p4 = scmp.lt.s32.totalorder %s1094_s11, %s1094_s11 }
 0x113   :  { %905 = vmatprep.subr.bf16.mxu1 %v1022_v59  ;;  %927 = vmatprep.subr.bf16.mxu0 %v1023_v60  ;;  %v781_v59 = vand.u32 127, %v157_v15 }
 0x114   :  { %p1101_p5 = por %p1100_p4, %p1099_p3 }
 0x115   :  { %vm782_vm3 = vcmp.lt.s32.totalorder %v781_v59, 6 }
 0x116   :  { %906 = vmatpush3.bf16.msra.mxu1 %v1024_v61  ;;  %928 = vmatpush3.bf16.msra.mxu0 %v1025_v62  ;;  %p1102_p6 = pnand %p1101_p5, %p1095_p2 }
 0x117   :  { %907 = vmatprep.subr.bf16.mxu1 %v1026_v63  ;;  %929 = vmatprep.subr.bf16.mxu0 %v1027_v0 }
 0x11a   :  { %908 = vmatpush3.bf16.msra.mxu1 %v1028_v1  ;;  %930 = vmatpush3.bf16.msra.mxu0 %v1029_v2 }
 0x11b   :  { %909 = vmatprep.subr.bf16.mxu1 %v1030_v3  ;;  %931 = vmatprep.subr.bf16.mxu0 %v1031_v4 }
 0x11e   :  { %910 = vmatpush3.bf16.msra.mxu1 %v1032_v5  ;;  %932 = vmatpush3.bf16.msra.mxu0 %v1033_v6 }
 0x11f   :  { %911 = vmatprep.subr.bf16.mxu1 %v1034_v7  ;;  %933 = vmatprep.subr.bf16.mxu0 %v1035_v8 }
 0x122   :  { %912 = vmatpush3.bf16.msra.mxu1 %v1036_v9  ;;  %934 = vmatpush3.bf16.msra.mxu0 %v1037_v10 }
 0x123   :  { %913 = vmatprep.subr.bf16.mxu1 %v1038_v11  ;;  %935 = vmatprep.subr.bf16.mxu0 %v1039_v12 }
 0x126   :  { %914 = vmatpush3.bf16.msra.mxu1 %v1040_v13  ;;  %936 = vmatpush3.bf16.msra.mxu0 %v1041_v14 }
 0x1dc   :  { %v371_v26 = vpop.f32.mrb[0].mxu1  ;;  %v414_v27 = vpop.f32.mrb[4].mxu0 }
 0x1dd   :  { %v372_v28 = vadd.f32 %v371_v26, %v160_v22  ;;  %v415_v29 = vadd.f32 %v414_v27, %v168_v23  ;;  %v373_v30 = vpop.f32.mrb[1].mxu1  ;;  %v416_v31 = vpop.f32.mrb[5].mxu0 }
 0x1de   :  { %v374_v32 = vadd.f32 %v373_v30, %v164_v24  ;;  %v417_v33 = vadd.f32 %v416_v31, %v172_v25  ;;  %v375_v34 = vpop.f32.mrb[2].mxu1  ;;  %v418_v35 = vpop.f32.mrb[6].mxu0 }
 0x1df   :  { %v376_v36 = vadd.f32 %v375_v34, %v160_v22  ;;  %v419_v37 = vadd.f32 %v418_v35, %v168_v23  ;;  %v377_v38 = vpop.f32.mrb[3].mxu1  ;;  %v420_v39 = vpop.f32.mrb[7].mxu0  ;;  %v423_v42 = vmax.f32 %v372_v28, 0.0  ;;  %v425_v43 = vmax.f32 %v415_v29, 0.0 }
 0x1e0   :  { %v378_v40 = vadd.f32 %v377_v38, %v164_v24  ;;  %v421_v41 = vadd.f32 %v420_v39, %v172_v25  ;;  %v424_v46 = vmax.f32 %v374_v32, 0.0  ;;  %v426_v47 = vmax.f32 %v417_v33, 0.0 }
 0x1e1   :  { %v427_v44 = vmax.f32 %v376_v36, 0.0  ;;  %v429_v45 = vmax.f32 %v419_v37, 0.0 }
 0x1e2   :  { %v428_v48 = vmax.f32 %v378_v40, 0.0  ;;  %v430_v49 = vmax.f32 %v421_v41, 0.0 }
 0x1e3   :  { %v431_v50 = vpack.c.bf16 %v427_v44, %v423_v42  ;;  %v433_v51 = vpack.c.bf16 %v429_v45, %v425_v43 }
 0x1e4   :  { %v432_v52 = vpack.c.bf16 %v428_v48, %v424_v46  ;;  %v434_v53 = vpack.c.bf16 %v430_v49, %v426_v47 }
 0x1e6   :  { %730 = vmatprep.mubr.bf16.mxu1 %v432_v52  ;;  %771 = vmatprep.mubr.bf16.mxu0 %v434_v53 }
 0x1e7   :  { %731 = vmatmul.mubr.bf16.vlgmr.msra.gmra.mrb[4].mxu1 %v431_v50  ;;  %772 = vmatmul.mubr.bf16.vlgmr.msra.gmra.mrb[8].mxu0 %v433_v51 }
 0x2ba   :  { %v915_v54 = vpop.f32.mrb[4].mxu1  ;;  %v937_v55 = vpop.f32.mrb[8].mxu0 }
 0x2bb   :  { %v916_v57 = vpop.f32.mrb[5].mxu1  ;;  %v938_v58 = vpop.f32.mrb[9].mxu0 }
 0x2bc   :  { %v917_v60 = vadd.f32 %v916_v57, %v915_v54  ;;  %v939_v61 = vadd.f32 %v938_v58, %v937_v55  ;;  %v918_v62 = vpop.f32.mrb[6].mxu1  ;;  %v940_v63 = vpop.f32.mrb[10].mxu0 }
 0x2bd   :  { %v919_v0 = vpop.f32.mrb[7].mxu1  ;;  %v941_v1 = vpop.f32.mrb[11].mxu0 }
 0x2be   :  { %v733_v2 = vadd.f32 %v917_v60, %v864_v56  ;;  %v920_v3 = vadd.f32 %v919_v0, %v918_v62  ;;  %v942_v4 = vadd.f32 %v941_v1, %v940_v63 }
 0x2c0   :  { %v736_v5 = vadd.f32 %v920_v3, %v864_v56  ;;  %v774_v6 = vadd.f32 %v939_v61, %v733_v2 }
 0x2c2   :  { %v783_v7 = vsel %vm782_vm3, %v774_v6, -1e+30  ;;  %v777_v8 = vadd.f32 %v942_v4, %v736_v5 }
 0x2c3   :  { %785 = vmax.xlane.f32.xlu0 %v783_v7 }
 0x2c4   :  { %v784_v9 = vsel %vm782_vm3, %v777_v8, -1e+30 }
 0x2c7   :  { %787 = vmax.xlane.f32.xlu0 %v784_v9 }
 0x350   :  { %v786_v10 = vpop.xlane.xlu0 %785 }
 0x351   :  { %v789_v11 = vsub.f32 %v783_v7, %v786_v10 }
 0x353   :  { %v791_v12 = vmul.f32 1.442695, %v789_v11 }
 0x354   :  { %v788_v13 = vpop.xlane.xlu0 %787 }
 0x355   :  { %1042 = vpow2.f32 %v791_v12  ;;  %v790_v14 = vsub.f32 %v784_v9, %v788_v13 }
 0x357   :  { %v793_v15 = vmul.f32 1.442695, %v790_v14 }
 0x359   :  { %1044 = vpow2.f32 %v793_v15 }
 0x35f   :  { %v1043_v16 = vpop.eup %1042 }
 0x360   :  { %795 = vadd.xlane.f32.xlu1 %v1043_v16 }
 0x363   :  { %v1045_v17 = vpop.eup %1044 }
 0x364   :  { %797 = vadd.xlane.f32.xlu1 %v1045_v17 }
 0x3ed   :  { %v796_v18 = vpop.xlane.xlu1 %795 }
 0x3ee   :  { %1046 = vrcp.f32 %v796_v18 }
 0x3f1   :  { %v798_v19 = vpop.xlane.xlu1 %797 }
 0x3f2   :  { %1048 = vrcp.f32 %v798_v19 }
 0x3f8   :  { %v1047_v20 = vpop.eup %1046 }
 0x3f9   :  { %v801_v21 = vmul.f32 %v1047_v20, %v796_v18 }
 0x3fb   :  { %v803_v22 = vsub.f32 2.0, %v801_v21 }
 0x3fc   :  { %v1049_v23 = vpop.eup %1048 }
 0x3fd   :  { %v805_v24 = vmul.f32 %v1047_v20, %v803_v22  ;;  %v802_v25 = vmul.f32 %v1049_v23, %v798_v19 }
 0x3ff   :  { %v807_v26 = vmul.f32 %v1043_v16, %v805_v24  ;;  %v804_v27 = vsub.f32 2.0, %v802_v25 }
 0x401   :  { %809 = vst [vmem:[#allocation7] sm:$0xff] %v807_v26  ;;  %v806_v28 = vmul.f32 %v1049_v23, %v804_v27 }
 0x403   :  { %v808_v29 = vmul.f32 %v1045_v17, %v806_v28 }
 0x405   :  { %810 = vst [vmem:[#allocation7 + $0x8] sm:$0xff] %v808_v29 }
 0x406   :  { %1105 = shalt.err (!%p1102_p6)
}
 0x407   :  { %s1106_s14 = scalar_lea.hbm %s1232_s7, 256 }
 0x408   :  { %p1107_p7 = scmp.ne.s32.totalorder %s1232_s7, %s1106_s14  ;;  %p1110_p8 = scmp.lt.u32.totalorder %s1106_s14, %s1232_s7 }
 0x40a   :  { %p1112_p9 = pnand %p1110_p8, %p1107_p7 }
 0x40c   :  { %1115 = shalt.err (!%p1112_p9)
}
 0x40d   :  { %s1132_s19 = smov 128   ;;  %s1133_s20 = smov 8  }
 0x40e   :  { %822 = dma.vmem_to_hbm [thread:$0]  %s817_s10, 256, %s1232_s7, [#allocation4], %s1132_s19, %s1132_s19, %s1133_s20  }
 0x40f   :  { %1120 = dma.done.wait [#allocation4], 256  }
 0x410   :  { %1121 = vsyncadd [#allocation4], 4294967040 }
 0x411   :  { %826 = vsyncpa [#allocation3], 1 }
 0x412   :  { %827 = vsyncpa [#allocation6], 1 }
 0x413   :  { %828 = vsyncpa [#allocation4], 1 }

</bundles_post_ra>
